<compile_context>
chip_gen: v7x
topology: tpu7x:2x2x1
jax: 0.10.0
libtpu: 0.0.40
codegen_flags: <defaults>
</compile_context>

<pallas_src>
import functools

import jax
import jax.numpy as jnp
from jax import lax
from jax.experimental import pallas as pl
from jax.experimental.pallas import tpu as pltpu


def _round_up(x, m):
    return ((x + m - 1) // m) * m


# --------------------------------------------------------------------------
# Single-step kernel: one fused dot ([B, Ns+Ni] @ [Ns+Ni, Npad]) + bias onto a
# lane-dense [B, Npad] output slab (unmasked full-width stores).
# --------------------------------------------------------------------------
def _lti_step_kernel(xu_ref, w_ref, bias_ref, out_ref):
    y = (jnp.dot(xu_ref[...], w_ref[...], preferred_element_type=jnp.float32)
         + bias_ref[...].astype(jnp.float32))
    out_ref[...] = y.astype(out_ref.dtype)


@functools.partial(jax.jit, static_argnames=("n_state", "n_obs"))
def lti_forward_pallas(state, inp, w_step, bias, *, n_state, n_obs):
    """One LTI step. Returns (next_state [B,Ns], obs [B,No])."""
    xu = jnp.concatenate([state, inp], axis=1)        # [B, Ns+Ni] (host concat)
    Bb, K = xu.shape
    Npad = w_step.shape[1]

    # Tile over batch so large B fits scoped VMEM (sized for v7x's 64 MiB).
    tb = Bb if Bb <= 512 else 512
    grid = (pl.cdiv(Bb, tb),)

    out = pl.pallas_call(
        _lti_step_kernel,
        out_shape=jax.ShapeDtypeStruct((Bb, Npad), state.dtype),
        grid_spec=pltpu.PrefetchScalarGridSpec(
            num_scalar_prefetch=0,
            grid=grid,
            in_specs=[
                pl.BlockSpec((tb, K), lambda i: (i, 0)),       # [x|u] batch tile
                pl.BlockSpec((K, Npad), lambda i: (0, 0)),     # merged weights
                pl.BlockSpec((1, Npad), lambda i: (0, 0)),     # bias
            ],
            out_specs=pl.BlockSpec((tb, Npad), lambda i: (i, 0)),
        ),
        compiler_params=pltpu.CompilerParams(
            dimension_semantics=("parallel",)),
        cost_estimate=pl.CostEstimate(
            flops=2 * Bb * K * Npad,
            transcendentals=0,
            bytes_accessed=4 * (xu.size + w_step.size + bias.size + Bb * Npad),
        ),
    )(xu, w_step, bias)
    return out[:, :n_state], out[:, n_state:n_state + n_obs]


# --------------------------------------------------------------------------
# Rollout kernel: Tc time steps per grid iteration, weights resident in VMEM,
# input term hoisted into one (Tc*B)-row matmul, full-slab state carry.
# --------------------------------------------------------------------------
def _lti_rollout_kernel(x0_ref, u_ref, wx_ref, wu_ref, bias_ref, out_ref,
                        x_carry, f_buf):
    Tc, Bb, Ni = u_ref.shape
    Npad = wx_ref.shape[1]

    @pl.when(pl.program_id(0) == 0)
    def _():
        # x0 is already zero-padded to the full [B, Npad] slab on the host.
        x_carry[...] = x0_ref[...].astype(jnp.float32)

    # Hoisted input-driven term for the whole chunk: one big (Tc*B)-row matmul
    # (fills the MXU M dimension; removes one dot + bias add from every
    # sequential step).  Operands stay in native dtype; accumulate in f32.
    u2 = u_ref[...].reshape(Tc * Bb, Ni)
    f = jnp.dot(u2, wu_ref[...], preferred_element_type=jnp.float32)
    f_buf[...] = (f + bias_ref[...].astype(jnp.float32)).reshape(Tc, Bb, Npad)

    wx = wx_ref[...]                                   # [Npad, Npad], resident

    def step(t, x):
        # Full-slab recurrence: rows Ns..Npad of Wx are zero, so the obs/pad
        # columns of the carried slab contribute nothing.
        y = jnp.dot(x.astype(wx.dtype), wx,
                    preferred_element_type=jnp.float32) + f_buf[t]
        out_ref[t] = y.astype(out_ref.dtype)
        return y

    unroll = True if Tc <= 64 else 8
    x_carry[...] = lax.fori_loop(0, Tc, step, x_carry[...], unroll=unroll)


@functools.partial(jax.jit, static_argnames=("n_state", "n_obs", "tc"))
def lti_rollout_pallas(x0_pad, inputs_seq, wx_full, wu, bias, *,
                       n_state, n_obs, tc):
    """T LTI steps, Tc per grid iteration.  inputs_seq: [T, B, Ni].
    Returns (states [T,B,Ns] = x_1..x_T, obs [T,B,No] = y_0..y_{T-1})."""
    T, Bb, Ni = inputs_seq.shape
    Npad = wx_full.shape[1]

    n_chunks = -(-T // tc)
    T_pad = n_chunks * tc
    if T_pad != T:
        # Padded steps compute garbage past T; they are sliced off below.
        inputs_seq = jnp.pad(inputs_seq, ((0, T_pad - T), (0, 0), (0, 0)))

    out = pl.pallas_call(
        _lti_rollout_kernel,
        out_shape=jax.ShapeDtypeStruct((T_pad, Bb, Npad), x0_pad.dtype),
        grid_spec=pltpu.PrefetchScalarGridSpec(
            num_scalar_prefetch=0,
            grid=(n_chunks,),
            in_specs=[
                pl.BlockSpec((Bb, Npad), lambda c: (0, 0)),       # x0 (resident)
                pl.BlockSpec((tc, Bb, Ni), lambda c: (c, 0, 0)),  # u chunk
                pl.BlockSpec((Npad, Npad), lambda c: (0, 0)),     # Wx (resident)
                pl.BlockSpec((Ni, Npad), lambda c: (0, 0)),       # Wu (resident)
                pl.BlockSpec((1, Npad), lambda c: (0, 0)),        # bias (resident)
            ],
            out_specs=pl.BlockSpec((tc, Bb, Npad), lambda c: (c, 0, 0)),
            scratch_shapes=[
                pltpu.VMEM((Bb, Npad), jnp.float32),      # full-slab state carry
                pltpu.VMEM((tc, Bb, Npad), jnp.float32),  # hoisted f = u@Wu+bias
            ],
        ),
        compiler_params=pltpu.CompilerParams(
            dimension_semantics=("arbitrary",)),          # sequential in time
        cost_estimate=pl.CostEstimate(
            flops=2 * T_pad * Bb * (Npad + Ni) * Npad,
            transcendentals=0,
            bytes_accessed=4 * (x0_pad.size + inputs_seq.size + wx_full.size
                                + wu.size + bias.size + T_pad * Bb * Npad),
        ),
    )(x0_pad, inputs_seq, wx_full, wu, bias)

    states = out[:T, :, :n_state]
    obs = out[:T, :, n_state:n_state + n_obs]
    return states, obs


# --------------------------------------------------------------------------
# JAX mirror of pypose LTI (System subclass).
# --------------------------------------------------------------------------
class LTIJax:
    """Discrete-time LTI system with fused, pre-packed Pallas kernels."""

    # TODO(synk): batched per-sample A/B/C/D matrices (torch bmv over a batch
    # of system matrices) are not supported; a single shared LTI is assumed.

    def __init__(self, A, B, C, D, c1=None, c2=None):
        A, B, C, D = (jnp.asarray(m) for m in (A, B, C, D))
        if A.ndim != 2 or B.ndim != 2 or C.ndim != 2 or D.ndim != 2:
            raise NotImplementedError(
                "LTIJax: batched (3-D) system matrices are not supported.")
        self._A, self._B, self._C, self._D = A, B, C, D
        self._c1 = None if c1 is None else jnp.asarray(c1)
        self._c2 = None if c2 is None else jnp.asarray(c2)

        Ns, Ni, No = A.shape[0], B.shape[1], C.shape[0]
        self.n_state, self.n_input, self.n_obs = Ns, Ni, No
        dtype = A.dtype
        Npad = _round_up(Ns + No, 128)   # lane-dense output slab width
        self._npad = Npad

        # Wx padded to [Npad, Npad] (rows Ns..Npad zero) so the rollout carry
        # can be the full slab: Wx = [[A^T | C^T | 0]; 0].
        wx_full = jnp.zeros((Npad, Npad), dtype)
        wx_full = wx_full.at[:Ns, :Ns].set(A.T).at[:Ns, Ns:Ns + No].set(C.T)
        # Wu = [B^T | D^T | 0]
        wu = jnp.zeros((Ni, Npad), dtype)
        wu = wu.at[:, :Ns].set(B.T).at[:, Ns:Ns + No].set(D.T)
        # bias = [c1 | c2 | 0]
        bias = jnp.zeros((1, Npad), dtype)
        if self._c1 is not None:
            bias = bias.at[0, :Ns].set(self._c1.astype(dtype))
        if self._c2 is not None:
            bias = bias.at[0, Ns:Ns + No].set(self._c2.astype(dtype))
        # Merged single-step weight: [Ns+Ni, Npad] so one dot covers x@Wx + u@Wu.
        w_step = jnp.concatenate([wx_full[:Ns], wu], axis=0)

        self._wx_full, self._wu, self._bias, self._w_step = wx_full, wu, bias, w_step
        self._t = 0  # host-side time counter (Python int; avoids x64 issues)

    # ---- System API ------------------------------------------------------
    def reset(self, t=0):
        self._t = int(t)
        return self

    @property
    def systime(self):
        return self._t

    @property
    def A(self): return self._A
    @property
    def B(self): return self._B
    @property
    def C(self): return self._C
    @property
    def D(self): return self._D
    @property
    def c1(self): return self._c1
    @property
    def c2(self): return self._c2

    def forward(self, state, inp):
        state = jnp.atleast_1d(jnp.asarray(state))
        inp = jnp.atleast_1d(jnp.asarray(inp))
        squeeze = False
        if state.ndim == 1:
            state, inp, squeeze = state[None, :], inp[None, :], True

        # NOTE: mutating Python-side attributes mirrors the torch module but is
        # not safe under jit/vmap of these methods.
        self.state, self.input = state, inp
        next_state, obs = lti_forward_pallas(
            state, inp, self._w_step, self._bias,
            n_state=self.n_state, n_obs=self.n_obs)

        self._t += 1  # forward_hook: advance system time
        if squeeze:
            next_state, obs = next_state[0], obs[0]
        return next_state, obs

    __call__ = forward

    def rollout(self, state, inputs_seq, tc=None):
        """Run T steps in one pallas_call (Tc steps per grid iteration).
        inputs_seq: [T, B, Ni]."""
        state = jnp.atleast_2d(jnp.asarray(state))
        inputs_seq = jnp.asarray(inputs_seq)
        T = inputs_seq.shape[0]
        if tc is None:
            tc = min(T, 32)
        tc = max(1, min(int(tc), T))
        x0_pad = jnp.pad(state, ((0, 0), (0, self._npad - self.n_state)))
        states, obs = lti_rollout_pallas(
            x0_pad, inputs_seq, self._wx_full, self._wu, self._bias,
            n_state=self.n_state, n_obs=self.n_obs, tc=tc)
        self._t += T
        return states, obs


if __name__ == "__main__":
    key = jax.random.PRNGKey(0)
    ks = jax.random.split(key, 8)

    batch, n_state, n_input, n_obs = 8, 32, 16, 24
    dtype = jnp.float32

    A = jax.random.normal(ks[0], (n_state, n_state), dtype) * 0.1
    B = jax.random.normal(ks[1], (n_state, n_input), dtype) * 0.1
    C = jax.random.normal(ks[2], (n_obs, n_state), dtype) * 0.1
    D = jax.random.normal(ks[3], (n_obs, n_input), dtype) * 0.1
    c1 = jax.random.normal(ks[4], (n_state,), dtype) * 0.1
    c2 = jax.random.normal(ks[5], (n_obs,), dtype) * 0.1

    state = jax.random.normal(ks[6], (batch, n_state), dtype)
    inp = jax.random.normal(ks[7], (batch, n_input), dtype)

    lti = LTIJax(A, B, C, D, c1, c2)

    # --- single step ------------------------------------------------------
    next_state, obs = lti(state, inp)
    jax.block_until_ready((next_state, obs))

    ref_ns = state @ A.T + inp @ B.T + c1
    ref_ob = state @ C.T + inp @ D.T + c2
    assert next_state.shape == (batch, n_state)
    assert obs.shape == (batch, n_obs)
    assert jnp.allclose(next_state, ref_ns, atol=1e-4, rtol=1e-4)
    assert jnp.allclose(obs, ref_ob, atol=1e-4, rtol=1e-4)
    assert lti.systime == 1

    # --- chunked T-step rollout (Tc steps per grid iteration, T % Tc != 0) --
    T, Tc = 10, 4
    u_seq = jax.random.normal(jax.random.PRNGKey(1), (T, batch, n_input), dtype)
    states_seq, obs_seq = lti.rollout(state, u_seq, tc=Tc)
    jax.block_until_ready((states_seq, obs_seq))

    x = state
    ref_states, ref_obs = [], []
    for t in range(T):
        ref_obs.append(x @ C.T + u_seq[t] @ D.T + c2)
        x = x @ A.T + u_seq[t] @ B.T + c1
        ref_states.append(x)
    ref_states = jnp.stack(ref_states)
    ref_obs = jnp.stack(ref_obs)

    assert states_seq.shape == (T, batch, n_state)
    assert obs_seq.shape == (T, batch, n_obs)
    assert jnp.allclose(states_seq, ref_states, atol=1e-4, rtol=1e-4)
    assert jnp.allclose(obs_seq, ref_obs, atol=1e-4, rtol=1e-4)
    assert lti.systime == 1 + T

    print("KERNEL_OK")
</pallas_src>

<mosaic_0001>
module attributes {stable_mosaic.version = 11 : i64} {
  func.func @_lti_step_kernel(%arg0: i32, %arg1: memref<8x48xf32, #tpu.memory_space<vmem>>, %arg2: memref<48x128xf32, #tpu.memory_space<vmem>>, %arg3: memref<1x128xf32, #tpu.memory_space<vmem>>, %arg4: memref<8x128xf32, #tpu.memory_space<vmem>>) attributes {dimension_semantics = [#tpu.dimension_semantics<parallel>], iteration_bounds = array<i64: 1>, scalar_prefetch = 0 : i64, scratch_operands = 0 : i64, tpu.core_type = #tpu.core_type<tc>, window_params = [{transform_indices = @transform_0, window_bounds = array<i64: 8, 48>}, {pipeline_mode = #tpu.pipeline_mode<synchronous>, transform_indices = @transform_1, window_bounds = array<i64: 48, 128>}, {pipeline_mode = #tpu.pipeline_mode<synchronous>, transform_indices = @transform_2, window_bounds = array<i64: 1, 128>}, {transform_indices = @transform_3, window_bounds = array<i64: 8, 128>}]} {
    %c0 = arith.constant 0 : index
    %c0_0 = arith.constant 0 : index
    %0 = vector.load %arg1[%c0, %c0_0] : memref<8x48xf32, #tpu.memory_space<vmem>>, vector<8x48xf32>
    %c0_1 = arith.constant 0 : index
    %c0_2 = arith.constant 0 : index
    %1 = vector.load %arg2[%c0_1, %c0_2] : memref<48x128xf32, #tpu.memory_space<vmem>>, vector<48x128xf32>
    %cst = arith.constant dense<0.000000e+00> : vector<8x128xf32>
    %2 = tpu.matmul %0, %1, %cst {dimension_numbers = #tpu.dot_dimension_numbers<[1], [0], [0], [1], [0, 0, 1, 1], [], []>} : vector<8x48xf32>, vector<48x128xf32>, vector<8x128xf32> -> vector<8x128xf32>
    %c0_3 = arith.constant 0 : index
    %c0_4 = arith.constant 0 : index
    %3 = vector.load %arg3[%c0_3, %c0_4] : memref<1x128xf32, #tpu.memory_space<vmem>>, vector<1x128xf32>
    %4 = vector.broadcast %3 : vector<1x128xf32> to vector<8x128xf32>
    %5 = arith.addf %2, %4 : vector<8x128xf32>
    %c0_5 = arith.constant 0 : index
    %c0_6 = arith.constant 0 : index
    %6 = vector.load %arg4[%c0_5, %c0_6] : memref<8x128xf32, #tpu.memory_space<vmem>>, vector<8x128xf32>
    tpu.vector_store %arg4[%c0_5, %c0_6], %5 {strides = array<i32>} : memref<8x128xf32, #tpu.memory_space<vmem>>, vector<8x128xf32>,
    return
  }
  func.func @transform_0(%arg0: i32) -> (i32, i32) {
    %c0_i32 = arith.constant 0 : i32
    %c0_i32_0 = arith.constant 0 : i32
    return %arg0, %c0_i32 : i32, i32
  }
  func.func @transform_1(%arg0: i32) -> (i32, i32) {
    %c0_i32 = arith.constant 0 : i32
    %c0_i32_0 = arith.constant 0 : i32
    %c0_i32_1 = arith.constant 0 : i32
    return %c0_i32, %c0_i32_0 : i32, i32
  }
  func.func @transform_2(%arg0: i32) -> (i32, i32) {
    %c0_i32 = arith.constant 0 : i32
    %c0_i32_0 = arith.constant 0 : i32
    %c0_i32_1 = arith.constant 0 : i32
    return %c0_i32, %c0_i32_0 : i32, i32
  }
  func.func @transform_3(%arg0: i32) -> (i32, i32) {
    %c0_i32 = arith.constant 0 : i32
    %c0_i32_0 = arith.constant 0 : i32
    return %arg0, %c0_i32 : i32, i32
  }
}

</mosaic_0001>

<bundles_post_ra>
// kernel: lti_forward_pallas.1
= control target key start
LH: loop header
LB: loop body
LE: loop exit
PB: predicated region body
PF: predicated region fallthrough
CT: control target
= control target key end

     0   :  { %8 = vsyncpa [#allocation3], 0  ;;  %s185_s12 = smov [#allocation2]   ;;  %s232_s0 = inlined_call_operand.vmem [shape: f32[8,48], index: 0, kind: input, shape index: {}]   ;;  %s233_s1 = inlined_call_operand.hbm [shape: f32[48,128], index: 1, kind: input, shape index: {}]   ;;  %s234_s2 = inlined_call_operand.vmem [shape: f32[1,128], index: 2, kind: input, shape index: {}]   ;;  %s235_s3 = inlined_call_operand.vmem [shape: f32[8,128], index: 3, kind: output, shape index: {}]  }
   0x1   :  { %s16_s13 = sshll.u32 %s185_s12, 4  ;;  %s161_s16 = scalar_lea.hbm %s233_s1, 768  ;;  %s17_s13 = int_to_ptr.vmem [resolvable:$true] %s16_s13 }
   0x2   :  { %p162_p0 = scmp.ne.s32.totalorder %s233_s1, %s161_s16  ;;  %p165_p1 = scmp.lt.u32.totalorder %s161_s16, %s233_s1 }
   0x4   :  { %p167_p2 = pnand %p165_p1, %p162_p0 }
   0x6   :  { %170 = shalt.err (!%p167_p2)
}
   0x7   :  { %s171_s21 = scalar_lea.vmem %s17_s13, 768  ;;  %p176_p4 = scmp.lt.s32.totalorder %s17_s13, %s17_s13 }
   0x8   :  { %p172_p3 = scmp.ne.s32.totalorder %s17_s13, %s171_s21  ;;  %p177_p5 = scmp.lt.s32.totalorder %s171_s21, %s171_s21 }
   0xa   :  { %p178_p6 = por %p177_p5, %p176_p4 }
   0xc   :  { %p179_p7 = pnand %p178_p6, %p172_p3 }
   0xe   :  { %182 = shalt.err (!%p179_p7)
}
   0xf   :  { %s186_s22 = smov 128   ;;  %s187_s23 = smov 8  }
  0x10   :  { %22 = dma.hbm_to_vmem [thread:$0]  %s233_s1, 768, %s17_s13, [#allocation3], %s186_s22, %s186_s22, %s187_s23  }
  0x11   :  { %183 = dma.done.wait [#allocation3], 768  }
  0x12   :  { %184 = vsyncadd [#allocation3], 4294966528  ;;  %v188_v0 = vmov 0.0|0.0   ;;  %vm189_vm0 = vmmov 0   ;;  %v190_v1 = vmov 0.0   ;;  %v29_v2 = vld [vmem:[#allocation2] sm:$0xff] }
  0x13   :  { %146 = vmatprep.subr.bf16.mxu0 %v188_v0  ;;  %143 = vmatprep.mubr.msk.f32.mxu0 %vm189_vm0, %v190_v1  ;;  %v30_v3 = vld [vmem:[#allocation2 + $0x8] sm:$0xff]  ;;  %v31_v4 = vld [vmem:[#allocation2 + $0x10] sm:$0xff]  ;;  %v32_v6 = vld [vmem:[#allocation2 + $0x18] sm:$0xff]  ;;  %vm42_vm1 = vcmask 392192  }
  0x14   :  { %v147_v5 = vpack.c.bf16 %v30_v3, %v29_v2  ;;  %v150_v7 = vpack.c.bf16 %v32_v6, %v31_v4  ;;  %v33_v8 = vld [vmem:[#allocation2 + $0x20] sm:$0xff]  ;;  %v34_v9 = vld [vmem:[#allocation2 + $0x28] sm:$0xff] }
  0x15   :  { %v153_v10 = vpack.c.bf16 %v34_v9, %v33_v8  ;;  %v28_v11 = vld [vmem:[%s232_s0] sm:$0xff] }
  0x16   :  { %148 = vmatpush3.bf16.msra.mxu0 %v147_v5  ;;  %v122_v12 = vld [vmem:[%s234_s2] ss:$0 sm:$0xff] }
  0x17   :  { %149 = vmatprep.subr.bf16.mxu0 %v188_v0 }
  0x1a   :  { %151 = vmatpush3.bf16.msra.mxu0 %v150_v7 }
  0x1b   :  { %152 = vmatprep.subr.bf16.mxu0 %v188_v0 }
  0x1e   :  { %154 = vmatpush3.bf16.msra.mxu0 %v153_v10 }
  0x21   :  { %144 = vmatmul.mubr.msk.f32.vlgmr.msra.gmra.mrb[0].mxu0 %vm42_vm1, %v28_v11 }
  0xf4   :  { %v112_v13 = vpop.f32.mrb[0].mxu0 }
  0xf5   :  { %v113_v14 = vadd.f32 %v122_v12, %v112_v13  ;;  %v145_v15 = vpop.f32.mrb[1].mxu0 }
  0xf7   :  { %116 = vst [vmem:[%s235_s3] sm:$0xff] %v113_v14 }
  0xf8   :  { %121 = vsyncpa [#allocation3], 1 }

</bundles_post_ra>
